<compile_context>
chip_gen: v7x
topology: tpu7x:2x2x1
jax: 0.10.0
libtpu: 0.0.40
codegen_flags: <defaults>
</compile_context>

<pallas_src>
import functools

import jax
import jax.numpy as jnp
from jax import lax
from jax.experimental import pallas as pl
from jax.experimental.pallas import tpu as pltpu


_LANES = 128
_TILE_TARGET_BYTES = 8 * 1024 * 1024  # per input tile (x2 for double buffering)


def _round_up(a, b):
    return -(-a // b) * b


def _max_identity(dtype):
    dtype = jnp.dtype(dtype)
    if jnp.issubdtype(dtype, jnp.floating):
        return jnp.asarray(-jnp.inf, dtype)
    if jnp.issubdtype(dtype, jnp.integer):
        return jnp.asarray(jnp.iinfo(dtype).min, dtype)
    return jnp.asarray(0, dtype)


def _choose_tiles(rows, hw, itemsize):
    """Pick (row_tile TR, col_tile TC) so one input tile is <= ~8 MiB."""
    target = _TILE_TARGET_BYTES
    sublane = {4: 8, 2: 16, 1: 32}.get(itemsize, 8)

    if rows <= _LANES:
        # Too few rows to shard across TensorCores: one row tile == all rows
        # (block dim equals the full array dim, so no row padding/OOB reads).
        tr = rows
        # TODO(synk): when rows <= 128 and H*W is huge, split the reduction
        # across a leading size-2 "parallel" axis (or core_map) so v7x's
        # second TensorCore isn't idle.
    else:
        # >= 2 row tiles, each a multiple of 128, so the "parallel" row axis
        # can be sharded across v7x's two TensorCores.
        rows_pad = _round_up(rows, sublane)
        tr_cap = _round_up(-(-rows_pad // 2), _LANES)
        # Largest 128-multiple row tile whose full-width slab fits the target.
        tr_fit = max(_LANES, (target // (hw * itemsize)) // _LANES * _LANES)
        tr = min(tr_cap, tr_fit)

    if tr * hw * itemsize <= target:
        return tr, hw  # reduction axis fits in a single block

    # Tile the reduction (H*W) axis too; TC is a multiple of 128, clamped to hw
    # so a block is never wider than the array.
    tc = max(_LANES, (target // (tr * itemsize)) // _LANES * _LANES)
    return tr, min(tc, hw)


def _concat_pool_kernel(x_ref, o_ref, max_acc, sum_acc, *, hw, acc_lanes):
    # x_ref:   (TR, TC) input tile
    # o_ref:   (2, TR) lane-dense output block (row 0 = max, row 1 = avg)
    # max_acc: (TR, acc_lanes) running max (input dtype)
    # sum_acc: (TR, acc_lanes) running sum (f32)
    k = pl.program_id(1)
    n_k = pl.num_programs(1)
    tr, tc = x_ref.shape
    ident = _max_identity(x_ref.dtype)

    @pl.when(k == 0)
    def _init():
        max_acc[...] = jnp.full(max_acc.shape, ident, max_acc.dtype)
        sum_acc[...] = jnp.zeros(sum_acc.shape, sum_acc.dtype)

    def accumulate(x_max, x_sum):
        if acc_lanes > 1:
            # Lane-wide elementwise accumulation: pure VPU work in the steady
            # state; the cross-lane reduce happens once, in the finalize.
            m = max_acc[...]
            s = sum_acc[...]
            for off in range(0, tc, acc_lanes):
                m = jnp.maximum(m, x_max[:, off:off + acc_lanes])
                s = s + x_sum[:, off:off + acc_lanes].astype(jnp.float32)
            max_acc[...] = m
            sum_acc[...] = s
        else:
            max_acc[...] = jnp.maximum(
                max_acc[...], jnp.max(x_max, axis=-1, keepdims=True))
            sum_acc[...] = sum_acc[...] + jnp.sum(
                x_sum, axis=-1, keepdims=True, dtype=jnp.float32)

    if hw % tc == 0:
        # Every reduction tile is full: unmasked hot path only.
        x = x_ref[...]
        accumulate(x, x)
    else:
        # Unmasked hot path for all but the last reduction tile.
        @pl.when(k < n_k - 1)
        def _hot():
            x = x_ref[...]
            accumulate(x, x)

        # Masking (iota + where) only on the single ragged last tile.
        @pl.when(k == n_k - 1)
        def _ragged():
            x = x_ref[...]
            col = k * tc + lax.broadcasted_iota(jnp.int32, (tr, tc), 1)
            valid = col < hw
            accumulate(jnp.where(valid, x, ident),
                       jnp.where(valid, x, jnp.zeros((), x.dtype)))

    @pl.when(k == n_k - 1)
    def _finalize():
        mx = max_acc[...]
        sm = sum_acc[...]
        if acc_lanes > 1:
            mx = jnp.max(mx, axis=-1, keepdims=True)
            sm = jnp.sum(sm, axis=-1, keepdims=True)
        inv = jnp.float32(1.0 / hw)
        o_ref[0:1, :] = jnp.transpose(mx, (1, 0)).astype(o_ref.dtype)
        o_ref[1:2, :] = jnp.transpose(sm * inv, (1, 0)).astype(o_ref.dtype)


def adaptive_concat_pool2d(x):
    """Equivalent of AdaptiveConcatPool2d() (output_size=1) forward pass."""
    N, C, H, W = x.shape
    rows = N * C
    hw = H * W
    x2 = x.reshape(rows, hw)  # contiguous collapse; no data movement

    itemsize = jnp.dtype(x.dtype).itemsize
    TR, TC = _choose_tiles(rows, hw, itemsize)
    n_i = -(-rows // TR)   # ragged last row tile allowed (no jnp.pad)
    n_k = -(-hw // TC)     # ragged last reduction tile allowed (masked in-kernel)

    # Lane-wide accumulators only pay off when the reduction axis is tiled.
    acc_lanes = _LANES if (n_k > 1 and TC % _LANES == 0) else 1

    kernel = functools.partial(_concat_pool_kernel, hw=hw, acc_lanes=acc_lanes)

    # Explicit VMEM budget: 2x double-buffered input tile + accumulators + slack.
    tile_bytes = TR * TC * itemsize
    scratch_bytes = TR * acc_lanes * (itemsize + 4)
    out_bytes = 2 * 2 * TR * itemsize
    vmem_limit = int(2 * tile_bytes + scratch_bytes + out_bytes + 8 * 2**20)

    cost = pl.CostEstimate(
        flops=2 * rows * hw,
        transcendentals=0,
        bytes_accessed=rows * hw * itemsize + 2 * rows * itemsize,
    )

    out = pl.pallas_call(
        kernel,
        out_shape=jax.ShapeDtypeStruct((2, n_i * TR), x.dtype),
        grid_spec=pltpu.PrefetchScalarGridSpec(
            num_scalar_prefetch=0,
            grid=(n_i, n_k),
            in_specs=[pl.BlockSpec((TR, TC), lambda i, k: (i, k))],
            out_specs=pl.BlockSpec((2, TR), lambda i, k: (0, i)),
            scratch_shapes=[
                pltpu.VMEM((TR, acc_lanes), x.dtype),      # running max
                pltpu.VMEM((TR, acc_lanes), jnp.float32),  # running sum (f32)
            ],
        ),
        compiler_params=pltpu.CompilerParams(
            dimension_semantics=("parallel", "arbitrary"),
            vmem_limit_bytes=vmem_limit),
        cost_estimate=cost,
    )(x2)

    # Garbage columns from the ragged last row tile are sliced off here; fused
    # concat: row 0 = max channels, row 1 = avg channels, per sample.
    out = out[:, :rows].reshape(2, N, C)
    out = jnp.transpose(out, (1, 0, 2)).reshape(N, 2 * C, 1, 1)
    return out


if __name__ == "__main__":
    key = jax.random.PRNGKey(0)
    N, C, H, W = 2, 4, 16, 16
    x = jax.random.normal(key, (N, C, H, W), dtype=jnp.float32)

    out = adaptive_concat_pool2d(x)
    out = jax.block_until_ready(out)

    # Reference check (plain JAX) for correctness.
    ref = jnp.concatenate(
        [
            jnp.max(x, axis=(2, 3), keepdims=True),
            jnp.mean(x, axis=(2, 3), keepdims=True),
        ],
        axis=1,
    )
    assert out.shape == (N, 2 * C, 1, 1), out.shape
    assert jnp.allclose(out, ref, atol=1e-6, rtol=1e-6), "mismatch vs reference"

    print("KERNEL_OK")
</pallas_src>

<mosaic_0001>
module attributes {stable_mosaic.version = 11 : i64} {
  func.func @_concat_pool_kernel(%arg0: i32, %arg1: i32, %arg2: memref<8x256xf32, #tpu.memory_space<vmem>>, %arg3: memref<2x8xf32, #tpu.memory_space<vmem>>, %arg4: memref<8x1xf32, #tpu.memory_space<vmem>>, %arg5: memref<8x1xf32, #tpu.memory_space<vmem>>) attributes {dimension_semantics = [#tpu.dimension_semantics<parallel>, #tpu.dimension_semantics<arbitrary>], iteration_bounds = array<i64: 1, 1>, scalar_prefetch = 0 : i64, scratch_operands = 2 : i64, tpu.core_type = #tpu.core_type<tc>, window_params = [{transform_indices = @transform_0, window_bounds = array<i64: 8, 256>}, {transform_indices = @transform_1, window_bounds = array<i64: 2, 8>}]} {
    %c0_i32 = arith.constant 0 : i32
    %0 = arith.cmpi eq, %arg1, %c0_i32 : i32
    %1 = arith.extui %0 : i1 to i32
    %cst = arith.constant 0xFF800000 : f32
    %c0_i32_0 = arith.constant 0 : i32
    %2 = arith.cmpi ne, %1, %c0_i32_0 : i32
    scf.if %2 {
      %17 = vector.broadcast %cst : f32 to vector<8x1xf32>
      %c0_14 = arith.constant 0 : index
      %c0_15 = arith.constant 0 : index
      %18 = vector.load %arg4[%c0_14, %c0_15] : memref<8x1xf32, #tpu.memory_space<vmem>>, vector<8x1xf32>
      tpu.vector_store %arg4[%c0_14, %c0_15], %17 {strides = array<i32>} : memref<8x1xf32, #tpu.memory_space<vmem>>, vector<8x1xf32>,
      %cst_16 = arith.constant 0.000000e+00 : f32
      %19 = vector.broadcast %cst_16 : f32 to vector<8x1xf32>
      %c0_17 = arith.constant 0 : index
      %c0_18 = arith.constant 0 : index
      %20 = vector.load %arg5[%c0_17, %c0_18] : memref<8x1xf32, #tpu.memory_space<vmem>>, vector<8x1xf32>
      tpu.vector_store %arg5[%c0_17, %c0_18], %19 {strides = array<i32>} : memref<8x1xf32, #tpu.memory_space<vmem>>, vector<8x1xf32>,
    } else {
    }
    %c0 = arith.constant 0 : index
    %c0_1 = arith.constant 0 : index
    %3 = vector.load %arg2[%c0, %c0_1] : memref<8x256xf32, #tpu.memory_space<vmem>>, vector<8x256xf32>
    %c0_2 = arith.constant 0 : index
    %c0_3 = arith.constant 0 : index
    %4 = vector.load %arg4[%c0_2, %c0_3] : memref<8x1xf32, #tpu.memory_space<vmem>>, vector<8x1xf32>
    %cst_4 = arith.constant dense<0xFF800000> : vector<8xf32>
    %5 = vector.multi_reduction <maximumf>, %3, %cst_4 [1] : vector<8x256xf32> to vector<8xf32>
    %6 = vector.shape_cast %5 : vector<8xf32> to vector<8x1xf32>
    %7 = arith.maximumf %4, %6 : vector<8x1xf32>
    %c0_5 = arith.constant 0 : index
    %c0_6 = arith.constant 0 : index
    %8 = vector.load %arg4[%c0_5, %c0_6] : memref<8x1xf32, #tpu.memory_space<vmem>>, vector<8x1xf32>
    tpu.vector_store %arg4[%c0_5, %c0_6], %7 {strides = array<i32>} : memref<8x1xf32, #tpu.memory_space<vmem>>, vector<8x1xf32>,
    %c0_7 = arith.constant 0 : index
    %c0_8 = arith.constant 0 : index
    %9 = vector.load %arg5[%c0_7, %c0_8] : memref<8x1xf32, #tpu.memory_space<vmem>>, vector<8x1xf32>
    %cst_9 = arith.constant dense<0.000000e+00> : vector<8xf32>
    %10 = vector.multi_reduction <add>, %3, %cst_9 [1] : vector<8x256xf32> to vector<8xf32>
    %11 = vector.shape_cast %10 : vector<8xf32> to vector<8x1xf32>
    %12 = arith.addf %9, %11 : vector<8x1xf32>
    %c0_10 = arith.constant 0 : index
    %c0_11 = arith.constant 0 : index
    %13 = vector.load %arg5[%c0_10, %c0_11] : memref<8x1xf32, #tpu.memory_space<vmem>>, vector<8x1xf32>
    tpu.vector_store %arg5[%c0_10, %c0_11], %12 {strides = array<i32>} : memref<8x1xf32, #tpu.memory_space<vmem>>, vector<8x1xf32>,
    %c0_i32_12 = arith.constant 0 : i32
    %14 = arith.cmpi eq, %arg1, %c0_i32_12 : i32
    %15 = arith.extui %14 : i1 to i32
    %c0_i32_13 = arith.constant 0 : i32
    %16 = arith.cmpi ne, %15, %c0_i32_13 : i32
    scf.if %16 {
      %c0_14 = arith.constant 0 : index
      %c0_15 = arith.constant 0 : index
      %17 = vector.load %arg4[%c0_14, %c0_15] : memref<8x1xf32, #tpu.memory_space<vmem>>, vector<8x1xf32>
      %c0_16 = arith.constant 0 : index
      %c0_17 = arith.constant 0 : index
      %18 = vector.load %arg5[%c0_16, %c0_17] : memref<8x1xf32, #tpu.memory_space<vmem>>, vector<8x1xf32>
      %19 = tpu.transpose %17, [1, 0] : vector<8x1xf32> -> vector<1x8xf32>
      %c0_18 = arith.constant 0 : index
      %c0_19 = arith.constant 0 : index
      %20 = vector.load %arg3[%c0_18, %c0_19] : memref<2x8xf32, #tpu.memory_space<vmem>>, vector<1x8xf32>
      tpu.vector_store %arg3[%c0_18, %c0_19], %19 {strides = array<i32>} : memref<2x8xf32, #tpu.memory_space<vmem>>, vector<1x8xf32>,
      %cst_20 = arith.constant 3.906250e-03 : f32
      %21 = vector.broadcast %cst_20 : f32 to vector<8x1xf32>
      %22 = arith.mulf %18, %21 : vector<8x1xf32>
      %23 = tpu.transpose %22, [1, 0] : vector<8x1xf32> -> vector<1x8xf32>
      %c1 = arith.constant 1 : index
      %c0_21 = arith.constant 0 : index
      %24 = vector.load %arg3[%c1, %c0_21] : memref<2x8xf32, #tpu.memory_space<vmem>>, vector<1x8xf32>
      tpu.vector_store %arg3[%c1, %c0_21], %23 {strides = array<i32>} : memref<2x8xf32, #tpu.memory_space<vmem>>, vector<1x8xf32>,
    } else {
    }
    return
  }
  func.func @transform_0(%arg0: i32, %arg1: i32) -> (i32, i32) {
    %c0_i32 = arith.constant 0 : i32
    return %arg0, %arg1 : i32, i32
  }
  func.func @transform_1(%arg0: i32, %arg1: i32) -> (i32, i32) {
    %c0_i32 = arith.constant 0 : i32
    %c0_i32_0 = arith.constant 0 : i32
    return %c0_i32, %arg0 : i32, i32
  }
}

</mosaic_0001>

<bundles_post_ra>
// kernel: tpu_custom_call.1
= control target key start
LH: loop header
LB: loop body
LE: loop exit
PB: predicated region body
PF: predicated region fallthrough
CT: control target
= control target key end

     0   :  { %6 = vsyncpa [#allocation5], 0  ;;  %s225_s0 = inlined_call_operand.hbm [shape: f32[8,256], index: 0, kind: input, shape index: {}]   ;;  %s226_s1 = inlined_call_operand.hbm [shape: f32[2,8], index: 1, kind: output, shape index: {}]  }
   0x1   :  { %7 = vsyncpa [#allocation6], 0  ;;  %s183_s6 = smov [#allocation4]   ;;  %s135_s10 = scalar_lea.hbm %s225_s0, 256 }
   0x2   :  { %s14_s7 = sshll.u32 %s183_s6, 4  ;;  %p136_p0 = scmp.ne.s32.totalorder %s225_s0, %s135_s10  ;;  %s15_s7 = int_to_ptr.vmem [resolvable:$true] %s14_s7 }
   0x3   :  { %p139_p1 = scmp.lt.u32.totalorder %s135_s10, %s225_s0 }
   0x5   :  { %p141_p2 = pnand %p139_p1, %p136_p0 }
   0x7   :  { %144 = shalt.err (!%p141_p2)
}
   0x8   :  { %s145_s15 = scalar_lea.vmem %s15_s7, 256  ;;  %p150_p4 = scmp.lt.s32.totalorder %s15_s7, %s15_s7 }
   0x9   :  { %p146_p3 = scmp.ne.s32.totalorder %s15_s7, %s145_s15  ;;  %p151_p5 = scmp.lt.s32.totalorder %s145_s15, %s145_s15 }
   0xb   :  { %p152_p6 = por %p151_p5, %p150_p4 }
   0xd   :  { %p153_p7 = pnand %p152_p6, %p146_p3 }
   0xf   :  { %156 = shalt.err (!%p153_p7)
}
  0x10   :  { %17 = dma.hbm_to_vmem [thread:$0]  %s225_s0, 256, %s15_s7, [#allocation5]  }
  0x11   :  { %179 = dma.done.wait [#allocation5], 256  }
  0x12   :  { %180 = vsyncadd [#allocation5], 4294967040  ;;  %vm25_vm0 = vcmask 7168   ;;  %v184_v0 = vmov 0.0   ;;  %v28_v1 = vld [vmem:[#allocation4] sm:$0xff]  ;;  %v29_v2 = vld [vmem:[#allocation4 + $0x8] sm:$0xff] }
  0x13   :  { %27 = vst.msk [vmem:[#allocation3] sm:$0xff] %vm25_vm0, %v184_v0  ;;  %v38_v3 = vadd.f32 %v29_v2, %v28_v1  ;;  %v31_v4 = vmax.f32 %v28_v1, %v29_v2  ;;  %v185_v5 = vmov -inf   ;;  %vm80_vm1 = vcmask 57344   ;;  %s186_s0 = smov [#allocation7]  }
  0x14   :  { %26 = vst.msk [vmem:[#allocation2] sm:$0xff] %vm25_vm0, %v185_v5  ;;  %s122_s18 = sshll.u32 %s186_s0, 4  ;;  %s123_s18 = int_to_ptr.vmem [resolvable:$true] %s122_s18 }
  0x15   :  { %39 = vadd.xlane.f32.xlu0 %v38_v3  ;;  %s157_s19 = scalar_lea.vmem %s123_s18, 32  ;;  %p162_p9 = scmp.lt.s32.totalorder %s123_s18, %s123_s18 }
  0x16   :  { %p158_p8 = scmp.ne.s32.totalorder %s123_s18, %s157_s19  ;;  %p163_p10 = scmp.lt.s32.totalorder %s157_s19, %s157_s19 }
  0x18   :  { %p164_p11 = por %p163_p10, %p162_p9 }
  0x19   :  { %32 = vmax.xlane.f32.xlu0 %v31_v4 }
  0x1a   :  { %v37_v6 = vld [vmem:[#allocation3] sm:$0xff]  ;;  %p165_p12 = pnand %p164_p11, %p158_p8 }
  0x1b   :  { %v30_v9 = vld [vmem:[#allocation2] sm:$0xff] }
  0xa2   :  { %v40_v7 = vpop.xlane.xlu0 %39 }
  0xa3   :  { %v41_v8 = vadd.f32 %v40_v7, %v37_v6 }
  0xa5   :  { %42 = vst.msk [vmem:[#allocation3] sm:$0xff] %vm25_vm0, %v41_v8 }
  0xa6   :  { %v33_v10 = vpop.xlane.xlu0 %32 }
  0xa7   :  { %v34_v11 = vmax.f32 %v30_v9, %v33_v10 }
  0xa9   :  { %36 = vst.msk [vmem:[#allocation2] sm:$0xff] %vm25_vm0, %v34_v11 }
  0xac   :  { %v47_v13 = vld [vmem:[#allocation3] sm:$0xff] }
  0xad   :  { %v82_v14 = vmul.f32 0.00390625, %v47_v13 }
  0xb0   :  { %v46_v12 = vld [vmem:[#allocation2] sm:$0xff] }
  0xb1   :  { %48 = vxpose.xlu1.b32.start.end [1/1] (short) (narrow) %v46_v12, 8 }
  0xb5   :  { %83 = vxpose.xlu1.b32.start.end [1/1] (short) (narrow) %v82_v14, 8 }
 0x131   :  { %v64_v15 = vpop.trf.xlu1 }
 0x132   :  { %81 = vst.msk [vmem:[#allocation7] sm:$0x1] %vm80_vm1, %v64_v15 }
 0x135   :  { %v99_v16 = vpop.trf.xlu1 }
 0x136   :  { %115 = vst.msk [vmem:[#allocation7 + $0x1] sm:$0x1] %vm80_vm1, %v99_v16 }
 0x137   :  { %168 = shalt.err (!%p165_p12)
}
 0x138   :  { %s169_s22 = scalar_lea.hbm %s226_s1, 32 }
 0x139   :  { %p170_p13 = scmp.ne.s32.totalorder %s226_s1, %s169_s22  ;;  %p173_p0 = scmp.lt.u32.totalorder %s169_s22, %s226_s1 }
 0x13b   :  { %p175_p1 = pnand %p173_p0, %p170_p13 }
 0x13d   :  { %178 = shalt.err (!%p175_p1)
}
 0x13e   :  { %125 = dma.vmem_to_hbm [thread:$0]  %s123_s18, 32, %s226_s1, [#allocation6]  }
 0x13f   :  { %181 = dma.done.wait [#allocation6], 32  }
 0x140   :  { %182 = vsyncadd [#allocation6], 4294967264 }
 0x141   :  { %129 = vsyncpa [#allocation5], 1 }
 0x142   :  { %130 = vsyncpa [#allocation6], 1 }

</bundles_post_ra>
